<compile_context>
chip_gen: v7x
topology: tpu7x:2x2x1
jax: 0.10.0
libtpu: 0.0.40
codegen_flags: <defaults>
</compile_context>

<pallas_src>
import functools

import jax
import jax.numpy as jnp
from jax.experimental import pallas as pl
from jax.experimental.pallas import tpu as pltpu


def _int_pow(x, n):
    """x**n for non-negative integer n via repeated squaring (VPU multiplies only)."""
    if n == 0:
        return jnp.ones_like(x)
    acc = None
    base = x
    while n:
        if n & 1:
            acc = base if acc is None else acc * base
        n >>= 1
        if n:
            base = base * base
    return acc


def _sublane_multiple(dtype):
    return {4: 8, 2: 16, 1: 32}.get(jnp.dtype(dtype).itemsize, 8)


def _focal_loss_kernel(w_ref, logp_ref, tgt_ref, out_ref, *, gamma, hw, tile,
                       padded, use_weight_reduce):
    t = pl.program_id(1)

    logp = logp_ref[...]                       # (bN, C, T) in the input dtype
    tgt = tgt_ref[...]                         # (bN, 1, T) int32
    _, C, T = logp.shape

    # channel index as a (1, C, 1) sublane iota; the compare broadcasts it over
    # lanes / batch instead of materializing a (C, T) int32 iota every step.
    cls = jax.lax.broadcasted_iota(jnp.int32, (1, C, 1), 1)
    onehot = cls == tgt                        # (bN, C, T) bool

    # gather log p_t with one select + sublane reduce in the input dtype
    # (exact: at most one nonzero per column); upcast only the (bN, 1, T) row.
    logp_t = jnp.sum(jnp.where(onehot, logp, jnp.zeros((), logp.dtype)),
                     axis=1, keepdims=True).astype(jnp.float32)

    if use_weight_reduce:
        # (C, 1) f32 weight column, gathered with a second reduce reusing `onehot`.
        w_t = jnp.sum(jnp.where(onehot, w_ref[...], 0.0), axis=1, keepdims=True)
    else:
        # very small C: short select chain over SMEM scalars.
        w_t = jnp.where(tgt == 0, w_ref[0], 0.0)
        for c in range(1, C):
            w_t = jnp.where(tgt == c, w_ref[c], w_t)            # (bN, 1, T)

    nll = -(w_t * logp_t)                      # NLLLoss(weight, reduce=False)
    inv_prob = 1.0 - jnp.exp(logp_t)           # 1 - p_t

    g = float(gamma)
    if g.is_integer() and g >= 0:
        focal = _int_pow(inv_prob, int(g))     # multiply chain: no pow / extra EUP
    else:
        # clamp guards exp(logp_t) rounding above 1 (reference would NaN there);
        # intentional, documented divergence.  pow written as exp(g*log(x)).
        focal = jnp.exp(g * jnp.log(jnp.maximum(inv_prob, 0.0)))

    contrib = nll * focal                      # (bN, 1, T)

    if padded:                                 # tail tile: mask out-of-range lanes
        pix = t * tile + jax.lax.broadcasted_iota(jnp.int32, (1, 1, T), 2)
        contrib = jnp.where(pix < hw, contrib, 0.0)

    # each grid step owns its own (1,1,1,1) partial-sum block -> both grid axes
    # stay "parallel" (v7x dual-TC shardable), no init / RMW scatter needed.
    out_ref[...] = jnp.reshape(jnp.sum(contrib), (1, 1, 1, 1))


def focal_loss_multilabel(logp, target, weight, gamma, *, lane_tile=None,
                          vmem_budget_bytes=12 * 1024 * 1024,
                          small_c_threshold=8):
    """logp: (N, C, H, W) log-probs (f32 or bf16); target: (N, H, W) int;
    weight: (C,) per-class NLL weights; gamma: python scalar focal exponent."""
    N, C, H, W = logp.shape
    HW = H * W

    logp_f = logp.reshape(N, C, HW)                         # keep input dtype
    tgt_f = target.reshape(N, 1, HW).astype(jnp.int32)
    # TODO(synk): pass targets as int8/int16 (C < 128) to cut target HBM traffic
    # (biggest win on v5e) once narrow-int (1, T) block lowering is validated.

    itemsize = jnp.dtype(logp_f.dtype).itemsize
    sub = _sublane_multiple(logp_f.dtype)
    c_pad = -(-C // sub) * sub                  # sublane padding of the logp block
    c_pad32 = -(-C // 8) * 8                    # padding of 32-bit intermediates

    # per pixel-lane VMEM cost of one batch element:
    #   double-buffered logp block + double-buffered int32 target block (pads to
    #   8 sublanes) + headroom for the live (C_pad, T) select/compare temporaries.
    lane_cost = 2 * (c_pad * itemsize + 8 * 4) + (c_pad * itemsize + c_pad32 * 4)

    if lane_tile is None:
        cap = vmem_budget_bytes // lane_cost
        cap = max(128, (cap // 128) * 128)
        T = HW if HW <= cap else int(cap)
    else:
        T = HW if int(lane_tile) >= HW else int(lane_tile)
    num_t = int(pl.cdiv(HW, T))

    # fold several batch elements into one block when a whole image fits a tile,
    # so small images still amortize the ~0.35us per-grid-step overhead.
    bN = 1
    if num_t == 1:
        cap_b = max(1, vmem_budget_bytes // (lane_cost * T))
        for d in range(min(N, cap_b), 0, -1):
            if N % d == 0:
                bN = d
                break
    num_n = N // bN

    use_weight_reduce = C > small_c_threshold
    if use_weight_reduce:
        w_arg = weight.reshape(C, 1).astype(jnp.float32)
        w_spec = pl.BlockSpec((C, 1), lambda n, t: (0, 0))               # VMEM col
    else:
        w_arg = weight.reshape(C).astype(jnp.float32)
        w_spec = pl.BlockSpec(memory_space=pltpu.MemorySpace.SMEM)       # scalars

    kernel = functools.partial(
        _focal_loss_kernel, gamma=float(gamma), hw=HW, tile=T,
        padded=(num_t * T != HW), use_weight_reduce=use_weight_reduce)

    need_bytes = bN * lane_cost * T
    vmem_limit = int(min(max(2 * need_bytes, 16 * 1024 * 1024), 48 * 1024 * 1024))

    partials = pl.pallas_call(
        kernel,
        out_shape=jax.ShapeDtypeStruct((num_n, num_t, 1, 1), jnp.float32),
        grid_spec=pltpu.PrefetchScalarGridSpec(
            num_scalar_prefetch=0,
            grid=(num_n, num_t),
            in_specs=[
                w_spec,                                              # class weights
                pl.BlockSpec((bN, C, T), lambda n, t: (n, 0, t)),    # log-probs
                pl.BlockSpec((bN, 1, T), lambda n, t: (n, 0, t)),    # targets
            ],
            out_specs=pl.BlockSpec((1, 1, 1, 1), lambda n, t: (n, t, 0, 0)),
        ),
        compiler_params=pltpu.CompilerParams(
            dimension_semantics=("parallel", "parallel"),
            vmem_limit_bytes=vmem_limit),
    )(w_arg, logp_f, tgt_f)

    return jnp.sum(partials) / (N * HW)         # plain mean over N*H*W pixels


def _reference(logp, target, weight, gamma):
    C = logp.shape[1]
    onehot = jax.nn.one_hot(target, C, axis=1, dtype=jnp.float32)   # (N,C,H,W)
    logp_t = jnp.sum(logp * onehot, axis=1)                         # (N,H,W)
    w_t = weight[target]                                            # (N,H,W)
    nll = -w_t * logp_t
    focal = (1.0 - jnp.exp(logp_t)) ** gamma
    return jnp.mean(nll * focal)


if __name__ == "__main__":
    key = jax.random.PRNGKey(0)
    k1, k2, k3, k4, k5, k6 = jax.random.split(key, 6)

    # --- test 1: f32 log-probs, integer gamma, batch-folded single-tile block --
    N, C, H, W = 2, 4, 16, 16
    gamma = 2.0
    weight = jnp.array([0.5, 1.0, 1.5, 2.0], dtype=jnp.float32)
    logits = jax.random.normal(k1, (N, C, H, W), dtype=jnp.float32)
    logp = jax.nn.log_softmax(logits, axis=1)                       # NLLLoss expects log-probs
    target = jax.random.randint(k2, (N, H, W), 0, C, dtype=jnp.int32)

    loss = jax.block_until_ready(focal_loss_multilabel(logp, target, weight, gamma))
    ref = _reference(logp, target, weight, gamma)
    assert jnp.allclose(loss, ref, rtol=2e-5, atol=1e-6), (loss, ref)

    # --- test 2: bf16 log-probs, float gamma, multi-tile HW with tail mask -----
    N2, C2, H2, W2 = 3, 5, 16, 18                 # HW = 288 -> tiles of 128/128/32
    gamma2 = 1.5
    weight2 = jnp.linspace(0.5, 2.0, C2).astype(jnp.float32)
    logits2 = jax.random.normal(k3, (N2, C2, H2, W2), dtype=jnp.float32)
    logp2 = jax.nn.log_softmax(logits2, axis=1).astype(jnp.bfloat16)
    target2 = jax.random.randint(k4, (N2, H2, W2), 0, C2, dtype=jnp.int32)

    loss2 = jax.block_until_ready(
        focal_loss_multilabel(logp2, target2, weight2, gamma2, lane_tile=128))
    ref2 = _reference(logp2.astype(jnp.float32), target2, weight2, gamma2)
    assert jnp.allclose(loss2, ref2, rtol=1e-4, atol=1e-5), (loss2, ref2)

    # --- test 3: larger C exercises the one-hot weight-reduce path -------------
    N3, C3, H3, W3 = 2, 20, 16, 16
    gamma3 = 2.0
    weight3 = jnp.linspace(0.25, 2.0, C3).astype(jnp.float32)
    logits3 = jax.random.normal(k5, (N3, C3, H3, W3), dtype=jnp.float32)
    logp3 = jax.nn.log_softmax(logits3, axis=1)
    target3 = jax.random.randint(k6, (N3, H3, W3), 0, C3, dtype=jnp.int32)

    loss3 = jax.block_until_ready(
        focal_loss_multilabel(logp3, target3, weight3, gamma3))
    ref3 = _reference(logp3, target3, weight3, gamma3)
    assert jnp.allclose(loss3, ref3, rtol=2e-5, atol=1e-6), (loss3, ref3)

    print("KERNEL_OK")
</pallas_src>

<mosaic_0001>
module attributes {stable_mosaic.version = 11 : i64} {
  func.func @_focal_loss_kernel(%arg0: i32, %arg1: i32, %arg2: memref<4xf32, #tpu.memory_space<smem>>, %arg3: memref<2x4x256xf32, #tpu.memory_space<vmem>>, %arg4: memref<2x1x256xi32, #tpu.memory_space<vmem>>, %arg5: memref<1x1x1x1xf32, #tpu.memory_space<vmem>>) attributes {dimension_semantics = [#tpu.dimension_semantics<parallel>, #tpu.dimension_semantics<parallel>], iteration_bounds = array<i64: 1, 1>, scalar_prefetch = 0 : i64, scratch_operands = 0 : i64, tpu.core_type = #tpu.core_type<tc>, window_params = [{transform_indices = @transform_0, window_bounds = array<i64: 4>}, {transform_indices = @transform_1, window_bounds = array<i64: 2, 4, 256>}, {transform_indices = @transform_2, window_bounds = array<i64: 2, 1, 256>}, {transform_indices = @transform_3, window_bounds = array<i64: 1, 1, 1, 1>}]} {
    %c0 = arith.constant 0 : index
    %c0_0 = arith.constant 0 : index
    %c0_1 = arith.constant 0 : index
    %0 = vector.load %arg3[%c0, %c0_0, %c0_1] : memref<2x4x256xf32, #tpu.memory_space<vmem>>, vector<2x4x256xf32>
    %c0_2 = arith.constant 0 : index
    %c0_3 = arith.constant 0 : index
    %c0_4 = arith.constant 0 : index
    %1 = vector.load %arg4[%c0_2, %c0_3, %c0_4] : memref<2x1x256xi32, #tpu.memory_space<vmem>>, vector<2x1x256xi32>
    %2 = tpu.iota {dimensions = array<i32: 1>} : vector<1x4x1xi32>
    %3 = vector.broadcast %2 : vector<1x4x1xi32> to vector<2x4x256xi32>
    %4 = vector.broadcast %1 : vector<2x1x256xi32> to vector<2x4x256xi32>
    %5 = arith.cmpi eq, %3, %4 : vector<2x4x256xi32>
    %cst = arith.constant 0.000000e+00 : f32
    %6 = vector.broadcast %cst : f32 to vector<2x4x256xf32>
    %7 = arith.select %5, %0, %6 : vector<2x4x256xi1>, vector<2x4x256xf32>
    %cst_5 = arith.constant dense<0.000000e+00> : vector<2x256xf32>
    %8 = vector.multi_reduction <add>, %7, %cst_5 [1] : vector<2x4x256xf32> to vector<2x256xf32>
    %9 = vector.shape_cast %8 : vector<2x256xf32> to vector<2x1x256xf32>
    %c0_i32 = arith.constant 0 : i32
    %10 = vector.broadcast %c0_i32 : i32 to vector<2x1x256xi32>
    %11 = arith.cmpi eq, %1, %10 : vector<2x1x256xi32>
    %c0_6 = arith.constant 0 : index
    %12 = memref.load %arg2[%c0_6] : memref<4xf32, #tpu.memory_space<smem>>
    %cst_7 = arith.constant 0.000000e+00 : f32
    %13 = vector.broadcast %12 : f32 to vector<2x1x256xf32>
    %14 = vector.broadcast %cst_7 : f32 to vector<2x1x256xf32>
    %15 = arith.select %11, %13, %14 : vector<2x1x256xi1>, vector<2x1x256xf32>
    %c1_i32 = arith.constant 1 : i32
    %16 = vector.broadcast %c1_i32 : i32 to vector<2x1x256xi32>
    %17 = arith.cmpi eq, %1, %16 : vector<2x1x256xi32>
    %c1 = arith.constant 1 : index
    %18 = memref.load %arg2[%c1] : memref<4xf32, #tpu.memory_space<smem>>
    %19 = vector.broadcast %18 : f32 to vector<2x1x256xf32>
    %20 = arith.select %17, %19, %15 : vector<2x1x256xi1>, vector<2x1x256xf32>
    %c2_i32 = arith.constant 2 : i32
    %21 = vector.broadcast %c2_i32 : i32 to vector<2x1x256xi32>
    %22 = arith.cmpi eq, %1, %21 : vector<2x1x256xi32>
    %c2 = arith.constant 2 : index
    %23 = memref.load %arg2[%c2] : memref<4xf32, #tpu.memory_space<smem>>
    %24 = vector.broadcast %23 : f32 to vector<2x1x256xf32>
    %25 = arith.select %22, %24, %20 : vector<2x1x256xi1>, vector<2x1x256xf32>
    %c3_i32 = arith.constant 3 : i32
    %26 = vector.broadcast %c3_i32 : i32 to vector<2x1x256xi32>
    %27 = arith.cmpi eq, %1, %26 : vector<2x1x256xi32>
    %c3 = arith.constant 3 : index
    %28 = memref.load %arg2[%c3] : memref<4xf32, #tpu.memory_space<smem>>
    %29 = vector.broadcast %28 : f32 to vector<2x1x256xf32>
    %30 = arith.select %27, %29, %25 : vector<2x1x256xi1>, vector<2x1x256xf32>
    %31 = arith.mulf %30, %9 : vector<2x1x256xf32>
    %cst_8 = arith.constant 0.000000e+00 : f32
    %32 = vector.broadcast %cst_8 : f32 to vector<2x1x256xf32>
    %33 = arith.subf %32, %31 : vector<2x1x256xf32>
    %34 = math.exp %9 : vector<2x1x256xf32>
    %cst_9 = arith.constant 1.000000e+00 : f32
    %35 = vector.broadcast %cst_9 : f32 to vector<2x1x256xf32>
    %36 = arith.subf %35, %34 : vector<2x1x256xf32>
    %37 = arith.mulf %36, %36 : vector<2x1x256xf32>
    %38 = arith.mulf %33, %37 : vector<2x1x256xf32>
    %39 = vector.shape_cast %38 : vector<2x1x256xf32> to vector<1x2x1x256xf32>
    %cst_10 = arith.constant dense<0.000000e+00> : vector<1xf32>
    %40 = vector.multi_reduction <add>, %39, %cst_10 [1, 2, 3] : vector<1x2x1x256xf32> to vector<1xf32>
    %41 = vector.shape_cast %40 : vector<1xf32> to vector<1x1x1x1xf32>
    %42 = vector.extract %41[0, 0, 0, 0] : f32 from vector<1x1x1x1xf32>
    %43 = vector.broadcast %42 : f32 to vector<1x1x1x1xf32>
    %c0_11 = arith.constant 0 : index
    %c0_12 = arith.constant 0 : index
    %c0_13 = arith.constant 0 : index
    %c0_14 = arith.constant 0 : index
    %44 = vector.load %arg5[%c0_11, %c0_12, %c0_13, %c0_14] : memref<1x1x1x1xf32, #tpu.memory_space<vmem>>, vector<1x1x1x1xf32>
    tpu.vector_store %arg5[%c0_11, %c0_12, %c0_13, %c0_14], %43 {strides = array<i32>} : memref<1x1x1x1xf32, #tpu.memory_space<vmem>>, vector<1x1x1x1xf32>,
    return
  }
  func.func @transform_0(%arg0: i32, %arg1: i32) -> i32 {
    %c0_i32 = arith.constant 0 : i32
    %c0_i32_0 = arith.constant 0 : i32
    return %c0_i32 : i32
  }
  func.func @transform_1(%arg0: i32, %arg1: i32) -> (i32, i32, i32) {
    %c0_i32 = arith.constant 0 : i32
    %c0_i32_0 = arith.constant 0 : i32
    return %arg0, %c0_i32, %arg1 : i32, i32, i32
  }
  func.func @transform_2(%arg0: i32, %arg1: i32) -> (i32, i32, i32) {
    %c0_i32 = arith.constant 0 : i32
    %c0_i32_0 = arith.constant 0 : i32
    return %arg0, %c0_i32, %arg1 : i32, i32, i32
  }
  func.func @transform_3(%arg0: i32, %arg1: i32) -> (i32, i32, i32, i32) {
    %c0_i32 = arith.constant 0 : i32
    %c0_i32_0 = arith.constant 0 : i32
    %c0_i32_1 = arith.constant 0 : i32
    return %arg0, %arg1, %c0_i32, %c0_i32_0 : i32, i32, i32, i32
  }
}

</mosaic_0001>

<bundles_post_ra>
// kernel: tpu_custom_call.1
= control target key start
LH: loop header
LB: loop body
LE: loop exit
PB: predicated region body
PF: predicated region fallthrough
CT: control target
= control target key end

     0   :  { %8 = vsyncpa [#allocation5], 0  ;;  %s479_s0 = inlined_call_operand.hbm [shape: f32[4], index: 0, kind: input, shape index: {}]   ;;  %s480_s1 = inlined_call_operand.hbm [shape: f32[2,4,256], index: 1, kind: input, shape index: {}]   ;;  %s481_s2 = inlined_call_operand.vmem [shape: s32[2,1,256], index: 2, kind: input, shape index: {}]   ;;  %s482_s3 = inlined_call_operand.hbm [shape: f32[1,1,1,1], index: 3, kind: output, shape index: {}]  }
   0x1   :  { %9 = vsyncpa [#allocation3], 0 }
   0x2   :  { %10 = vsyncpa [#allocation4], 0  ;;  %s302_s14 = scalar_lea.hbm %s479_s0, 16 }
   0x3   :  { %p303_p0 = scmp.ne.s32.totalorder %s479_s0, %s302_s14  ;;  %p306_p1 = scmp.lt.u32.totalorder %s302_s14, %s479_s0 }
   0x5   :  { %p308_p2 = pnand %p306_p1, %p303_p0 }
   0x7   :  { %311 = shalt.err (!%p308_p2)
}
   0x8   :  { %s362_s19 = smov [#allocation2]   ;;  %s363_s22 = smov [#allocation6]  }
   0x9   :  { %18 = dma.hbm_to_smem %s479_s0, 16, %s362_s19, [#allocation5]  }
   0xa   :  { %s24_s23 = sshll.u32 %s363_s22, 4  ;;  %s312_s26 = scalar_lea.hbm %s480_s1, 256  ;;  %s25_s23 = int_to_ptr.vmem [resolvable:$true] %s24_s23 }
   0xb   :  { %p313_p3 = scmp.ne.s32.totalorder %s480_s1, %s312_s26  ;;  %p316_p4 = scmp.lt.u32.totalorder %s312_s26, %s480_s1 }
   0xd   :  { %p318_p5 = pnand %p316_p4, %p313_p3 }
   0xf   :  { %321 = shalt.err (!%p318_p5)
}
  0x10   :  { %s322_s4 = scalar_lea.vmem %s25_s23, 256  ;;  %p327_p7 = scmp.lt.s32.totalorder %s25_s23, %s25_s23 }
  0x11   :  { %p323_p6 = scmp.ne.s32.totalorder %s25_s23, %s322_s4  ;;  %p328_p8 = scmp.lt.s32.totalorder %s322_s4, %s322_s4 }
  0x13   :  { %p329_p9 = por %p328_p8, %p327_p7 }
  0x15   :  { %p330_p10 = pnand %p329_p9, %p323_p6 }
  0x17   :  { %333 = shalt.err (!%p330_p10)
}
  0x18   :  { %s364_s0 = smov 128   ;;  %s365_s5 = smov 8  }
  0x19   :  { %30 = dma.hbm_to_vmem [thread:$0]  %s480_s1, 256, %s25_s23, [#allocation3], %s364_s0, %s364_s0, %s365_s5  }
  0x1a   :  { %356 = dma.done.wait [#allocation5], 16  }
  0x1b   :  { %357 = vsyncadd [#allocation5], 4294967280 }
  0x1c   :  { %358 = dma.done.wait [#allocation3], 256  }
  0x1d   :  { %359 = vsyncadd [#allocation3], 4294967040 }
  0x1e   :  { %39 = sfence }
  0x1f   :  { %v44_v0 = vlaneseq  ;;  %v40_v1 = vld [vmem:[#allocation6] sm:$0xff]  ;;  %v41_v2 = vld [vmem:[#allocation6 + $0x8] sm:$0xff]  ;;  %v417_v4 = vld [vmem:[%s481_s2] sm:$0x3]  ;;  %vm76_vm0 = vcmask 1043456   ;;  %s442_s1 = sld [smem:[#allocation2]] }
  0x20   :  { %v422_v5 = vld [vmem:[%s481_s2 + $0x2] sm:$0x3]  ;;  %v68_v8 = vcombine.high %v40_v1, %v40_v1  ;;  %v69_v9 = vcombine.high %v41_v2, %v41_v2  ;;  %v366_v38 = vmov 1966171168   ;;  %s444_s2 = sld [smem:[#allocation2 + $0x1]]  ;;  %vm105_vm5 = vcmp.eq.s32.totalorder %v417_v4, 0 }
  0x21   :  { %v412_v3 = vshrl.u32 %v44_v0, 7  ;;  %v135_v39 = vunpack.c.l.s4 %v366_v38  ;;  %s447_s12 = sld [smem:[#allocation2 + $0x2]]  ;;  %s450_s13 = sld [smem:[#allocation2 + $0x3]]  ;;  %vm106_vm6 = vcmp.eq.s32.totalorder %v422_v5, 0  ;;  %vm111_vm7 = vcmp.eq.s32.totalorder %v417_v4, 1 }
  0x22   :  { %vm112_vm8 = vcmp.eq.s32.totalorder %v422_v5, 1  ;;  %vm117_vm9 = vcmp.eq.s32.totalorder %v417_v4, 2  ;;  %vm118_vm10 = vcmp.eq.s32.totalorder %v422_v5, 2  ;;  %vm123_vm11 = vcmp.eq.s32.totalorder %v417_v4, 3  ;;  %s367_s14 = smov [#allocation7]  }
  0x23   :  { %v425_v6 = vsub.s32 0, %v412_v3  ;;  %v428_v7 = vsub.s32 1, %v412_v3  ;;  %v136_v49 = vunpack.c.0.s8 %v135_v39  ;;  %vm124_vm12 = vcmp.eq.s32.totalorder %v422_v5, 3  ;;  %s271_s15 = sshll.u32 %s367_s14, 4  ;;  %s272_s15 = int_to_ptr.vmem [resolvable:$true] %s271_s15 }
  0x24   :  { %vm245_vm13 = vcmask 1040384   ;;  %vm263_vm14 = vcmask 0   ;;  %s334_s17 = scalar_lea.vmem %s272_s15, 16  ;;  %s338_s18 = scalar_lea.vmem %s272_s15, 32 }
  0x25   :  { %v49_v10 = vrot.slane %v417_v4, %v425_v6  ;;  %v53_v11 = vrot.slane %v417_v4, %v428_v7  ;;  %v57_v12 = vrot.slane %v422_v5, %v425_v6  ;;  %v61_v13 = vrot.slane %v422_v5, %v428_v7  ;;  %p335_p11 = scmp.ne.s32.totalorder %s272_s15, %s334_s17  ;;  %p339_p12 = scmp.lt.s32.totalorder %s272_s15, %s272_s15 }
  0x26   :  { %v108_v48 = vstv %s442_s1  ;;  %v114_v55 = vstv %s444_s2  ;;  %v139_v57 = vsub.s32 %v136_v49, %v412_v3  ;;  %p340_p13 = scmp.lt.s32.totalorder %s338_s18, %s334_s17 }
  0x27   :  { %vm62_vm1 = vcmp.eq.s32.totalorder %v412_v3, %v49_v10  ;;  %vm63_vm2 = vcmp.eq.s32.totalorder %v412_v3, %v53_v11  ;;  %vm64_vm3 = vcmp.eq.s32.totalorder %v412_v3, %v57_v12  ;;  %vm65_vm4 = vcmp.eq.s32.totalorder %v412_v3, %v61_v13 }
  0x28   :  { %v72_v14 = vsel %vm62_vm1, %v40_v1, 0.0  ;;  %v73_v15 = vsel %vm63_vm2, %v68_v8, 0.0  ;;  %v74_v16 = vsel %vm64_vm3, %v41_v2, 0.0  ;;  %v75_v17 = vsel %vm65_vm4, %v69_v9, 0.0  ;;  %p341_p0 = por %p340_p13, %p339_p12 }
  0x29   :  { %v77_v18 = vsel %vm76_vm0, %v72_v14, 0.0  ;;  %v84_v19 = vsel %vm76_vm0, %v73_v15, 0.0  ;;  %v91_v20 = vsel %vm76_vm0, %v74_v16, 0.0  ;;  %v98_v21 = vsel %vm76_vm0, %v75_v17, 0.0 }
  0x2a   :  { %v78_v22 = vrot.slane %v77_v18, 4  ;;  %v85_v23 = vrot.slane %v84_v19, 4  ;;  %v92_v24 = vrot.slane %v91_v20, 4  ;;  %v99_v25 = vrot.slane %v98_v21, 4  ;;  %p342_p1 = pnand %p341_p0, %p335_p11 }
  0x2b   :  { %v109_v54 = vsel %vm105_vm5, %v108_v48, 0.0  ;;  %v110_v58 = vsel %vm106_vm6, %v108_v48, 0.0  ;;  %v120_v61 = vstv %s447_s12  ;;  %v126_v1 = vstv %s450_s13 }
  0x2c   :  { %v79_v26 = vadd.f32 %v78_v22, %v77_v18  ;;  %v86_v27 = vadd.f32 %v85_v23, %v84_v19  ;;  %v93_v28 = vadd.f32 %v92_v24, %v91_v20  ;;  %v100_v29 = vadd.f32 %v99_v25, %v98_v21 }
  0x2d   :  { %v115_v60 = vsel %vm111_vm7, %v114_v55, %v109_v54  ;;  %v116_v63 = vsel %vm112_vm8, %v114_v55, %v110_v58 }
  0x2e   :  { %v80_v30 = vrot.slane %v79_v26, 2  ;;  %v87_v31 = vrot.slane %v86_v27, 2  ;;  %v94_v32 = vrot.slane %v93_v28, 2  ;;  %v101_v33 = vrot.slane %v100_v29, 2 }
  0x2f   :  { %v121_v0 = vsel %vm117_vm9, %v120_v61, %v115_v60  ;;  %v122_v8 = vsel %vm118_vm10, %v120_v61, %v116_v63 }
  0x30   :  { %v81_v34 = vadd.f32 %v80_v30, %v79_v26  ;;  %v88_v35 = vadd.f32 %v87_v31, %v86_v27  ;;  %v95_v36 = vadd.f32 %v94_v32, %v93_v28  ;;  %v102_v37 = vadd.f32 %v101_v33, %v100_v29 }
  0x31   :  { %v127_v11 = vsel %vm123_vm11, %v126_v1, %v121_v0  ;;  %v128_v17 = vsel %vm124_vm12, %v126_v1, %v122_v8 }
  0x32   :  { %v82_v40 = vrot.slane %v81_v34, 1  ;;  %v89_v41 = vrot.slane %v88_v35, 1  ;;  %v96_v42 = vrot.slane %v95_v36, 1  ;;  %v103_v43 = vrot.slane %v102_v37, 1 }
  0x34   :  { %v83_v44 = vadd.f32 %v82_v40, %v81_v34  ;;  %v90_v45 = vadd.f32 %v89_v41, %v88_v35  ;;  %v97_v46 = vadd.f32 %v96_v42, %v95_v36  ;;  %v104_v47 = vadd.f32 %v103_v43, %v102_v37 }
  0x36   :  { %v169_v50 = vmul.f32 1.442695, %v83_v44  ;;  %v171_v51 = vmul.f32 1.442695, %v90_v45  ;;  %v173_v52 = vmul.f32 1.442695, %v97_v46  ;;  %v133_v56 = vcombine.low %v83_v44, %v90_v45 }
  0x37   :  { %v175_v53 = vmul.f32 1.442695, %v104_v47  ;;  %v148_v59 = vcombine.low %v97_v46, %v104_v47 }
  0x38   :  { %294 = vpow2.f32 %v169_v50  ;;  %v140_v62 = vrot.slane %v133_v56, %v139_v57 }
  0x39   :  { %296 = vpow2.f32 %v171_v51  ;;  %v155_v2 = vrot.slane %v148_v59, %v139_v57 }
  0x3a   :  { %298 = vpow2.f32 %v173_v52  ;;  %v147_v9 = vrot.slane %v140_v62, %v139_v57 }
  0x3b   :  { %300 = vpow2.f32 %v175_v53  ;;  %v162_v14 = vrot.slane %v155_v2, %v139_v57 }
  0x3c   :  { %v165_v20 = vmul.f32 %v147_v9, %v127_v11 }
  0x3d   :  { %v166_v23 = vmul.f32 %v162_v14, %v128_v17 }
  0x3e   :  { %v167_v26 = vsub.f32 0.0, %v165_v20 }
  0x3f   :  { %v168_v28 = vsub.f32 0.0, %v166_v23 }
  0x42   :  { %v295_v3 = vpop.eup %294 }
  0x43   :  { %v297_v10 = vpop.eup %296  ;;  %v177_v12 = vsub.f32 1.0, %v295_v3 }
  0x44   :  { %v299_v13 = vpop.eup %298  ;;  %v178_v15 = vsub.f32 1.0, %v297_v10 }
  0x45   :  { %v301_v16 = vpop.eup %300  ;;  %v179_v18 = vsub.f32 1.0, %v299_v13  ;;  %v181_v19 = vmul.f32 %v177_v12, %v177_v12 }
  0x46   :  { %v180_v21 = vsub.f32 1.0, %v301_v16  ;;  %v182_v4 = vmul.f32 %v178_v15, %v178_v15 }
  0x47   :  { %v183_v22 = vmul.f32 %v179_v18, %v179_v18 }
  0x48   :  { %v184_v24 = vmul.f32 %v180_v21, %v180_v21  ;;  %v189_v25 = vcombine.low %v181_v19, %v182_v4 }
  0x4a   :  { %v196_v5 = vrot.slane %v189_v25, %v139_v57  ;;  %v204_v27 = vcombine.low %v183_v22, %v184_v24 }
  0x4c   :  { %v203_v29 = vrot.slane %v196_v5, %v139_v57  ;;  %v211_v30 = vrot.slane %v204_v27, %v139_v57 }
  0x4e   :  { %v218_v31 = vrot.slane %v211_v30, %v139_v57  ;;  %v221_v32 = vmul.f32 %v203_v29, %v167_v26 }
  0x50   :  { %v222_v33 = vmul.f32 %v218_v31, %v168_v28  ;;  %v228_v34 = vrot.slane %v221_v32, %v425_v6  ;;  %v232_v35 = vrot.slane %v221_v32, %v428_v7 }
  0x52   :  { %v236_v36 = vrot.slane %v222_v33, %v425_v6  ;;  %v240_v37 = vrot.slane %v222_v33, %v428_v7  ;;  %v246_v38 = vsel %vm245_vm13, %v228_v34, 0.0  ;;  %v247_v39 = vsel %vm245_vm13, %v232_v35, 0.0 }
  0x53   :  { %v248_v40 = vadd.f32 %v247_v39, %v246_v38 }
  0x54   :  { %v249_v41 = vsel %vm245_vm13, %v236_v36, 0.0  ;;  %v251_v42 = vsel %vm245_vm13, %v240_v37, 0.0 }
  0x55   :  { %v250_v43 = vadd.f32 %v249_v41, %v248_v40 }
  0x57   :  { %v252_v44 = vadd.f32 %v251_v42, %v250_v43 }
  0x59   :  { %253 = vadd.xlane.f32.xlu0 %v252_v44 }
  0xe6   :  { %v254_v45 = vpop.xlane.xlu0 %253 }
  0xe7   :  { %v255_v46 = vrot.slane %v254_v45, 4 }
  0xe9   :  { %v256_v47 = vadd.f32 %v255_v46, %v254_v45 }
  0xeb   :  { %v257_v48 = vrot.slane %v256_v47, 2 }
  0xed   :  { %v258_v49 = vadd.f32 %v257_v48, %v256_v47 }
  0xef   :  { %v259_v50 = vrot.slane %v258_v49, 1 }
  0xf1   :  { %v260_v51 = vadd.f32 %v259_v50, %v258_v49 }
  0xf3   :  { %284 = vpush %v260_v51 }
 0x124   :  { %s285_s16 = spop %284 }
 0x125   :  { %v262_v6 = vstv %s285_s16 }
 0x126   :  { %264 = vst.msk [vmem:[#allocation7] sm:$0x1] %vm263_vm14, %v262_v6 }
 0x127   :  { %345 = shalt.err (!%p342_p1)
}
 0x128   :  { %s346_s21 = scalar_lea.hbm %s482_s3, 16 }
 0x129   :  { %p347_p2 = scmp.ne.s32.totalorder %s482_s3, %s346_s21  ;;  %p350_p3 = scmp.lt.u32.totalorder %s346_s21, %s482_s3 }
 0x12b   :  { %p352_p4 = pnand %p350_p3, %p347_p2 }
 0x12d   :  { %355 = shalt.err (!%p352_p4)
}
 0x12e   :  { %274 = dma.vmem_to_hbm [thread:$0]  %s272_s15, 16, %s482_s3, [#allocation4]  }
 0x12f   :  { %360 = dma.done.wait [#allocation4], 16  }
 0x130   :  { %361 = vsyncadd [#allocation4], 4294967280 }
 0x131   :  { %278 = vsyncpa [#allocation3], 1 }
 0x132   :  { %279 = vsyncpa [#allocation4], 1 }
 0x133   :  { %280 = vsyncpa [#allocation5], 1 }

</bundles_post_ra>
